<compile_context>
chip_gen: v6e
topology: v6e:2x2x1
jax: 0.10.0
libtpu: 0.0.40
codegen_flags: <defaults>
</compile_context>

<pallas_src>
import jax
import jax.numpy as jnp
from jax.experimental import pallas as pl
from jax.experimental.pallas import tpu as pltpu


def _round_up(x: int, m: int) -> int:
    return (x + m - 1) // m * m


_LANE = 128
_TB_CAP = 16384  # lanes per batch tile; 8k-32k per review, 16k keeps VMEM ~10 MiB


def _choose_tile(b: int):
    """Pick (batch tile, number of grid blocks)."""
    if b <= _LANE:
        return b, 1  # single full-array block (block dim == array dim is allowed)
    # Aim for >= 2 blocks on large batches so both v7x TensorCores get work.
    tb = min(_TB_CAP, _round_up(pl.cdiv(b, 2), _LANE))
    return tb, pl.cdiv(b, tb)


def _mlp_kernel(x_ref, w1_ref, b1_ref, w2_ref, b2_ref, w3_ref, b3_ref, o_ref):
    # x_ref: (36, TB) bf16, batch on lanes. Weights bf16, biases f32, output f32.
    xt = x_ref[...]                                                       # (36, TB)

    # f32 accumulation; intermediates stay f32 (kernel is memory-bound, MXU/VPU
    # slack is enormous, so the bf16 round-trips bought nothing).
    h1 = jnp.dot(w1_ref[...], xt, preferred_element_type=jnp.float32)    # (32, TB)
    h1 = jnp.maximum(h1 + b1_ref[...], 0.0)

    h2 = jnp.dot(w2_ref[...], h1, preferred_element_type=jnp.float32)    # (12, TB)
    h2 = jnp.maximum(h2 + b2_ref[...], 0.0)

    h3 = jnp.dot(w3_ref[...], h2, preferred_element_type=jnp.float32)    # (2, TB)
    o_ref[...] = h3 + b3_ref[...]


@jax.jit
def sitting_pose_net(candidate, params):
    """candidate: (B, 18, 2) float array; returns (B, 2) float32."""
    b = candidate.shape[0]
    x = candidate.astype(jnp.float32).reshape(b, -1)                     # Flatten -> (B, 36)
    assert x.shape[1] == 36, f"expected 36 flattened features, got {x.shape[1]}"

    tb, n_blocks = _choose_tile(b)

    # Feature-major bf16 view.  No zero-padded copy is materialized: the ragged
    # last tile is masked by Pallas, and allow_input_fusion lets XLA fuse this
    # transpose/cast directly into the pallas_call input.
    xt = x.T.astype(jnp.bfloat16)                                        # (36, B)

    w1 = params["w1"].astype(jnp.bfloat16)   # (32, 36)
    w2 = params["w2"].astype(jnp.bfloat16)   # (12, 32)
    w3 = params["w3"].astype(jnp.bfloat16)   # (2, 12)
    b1, b2, b3 = params["b1"], params["b2"], params["b3"]  # (32,1)/(12,1)/(2,1) f32

    resident = lambda shape: pl.BlockSpec(shape, lambda i: (0, 0))

    out_t = pl.pallas_call(
        _mlp_kernel,
        out_shape=jax.ShapeDtypeStruct((2, b), jnp.float32),
        grid=(n_blocks,),
        in_specs=[
            pl.BlockSpec((36, tb), lambda i: (0, i)),   # x tile, streamed per step
            resident((32, 36)),                         # w1 (VMEM-resident)
            resident((32, 1)),                          # b1
            resident((12, 32)),                         # w2
            resident((12, 1)),                          # b2
            resident((2, 12)),                          # w3
            resident((2, 1)),                           # b3
        ],
        out_specs=pl.BlockSpec((2, tb), lambda i: (0, i)),
        compiler_params=pltpu.CompilerParams(
            # Batch tiles are independent -> shard across v7x's two TensorCores
            # (no-op on v5e/v6e).  If "parallel" is observed not to split the
            # grid across cores, switch this axis to pltpu.CORE_PARALLEL.
            dimension_semantics=("parallel",),
            # Allow XLA to fuse the transpose/cast producer of x into the
            # kernel's input DMA so the (36, B) bf16 copy never hits HBM.
            allow_input_fusion=[True, False, False, False, False, False, False],
        ),
    )(xt, w1, b1, w2, b2, w3, b3)

    return out_t.T                                                       # (B, 2) f32


def init_params(key):
    """Deterministic init mimicking torch.nn.Linear (uniform(-1/sqrt(in), 1/sqrt(in))).

    Weights are torch-layout (out, in); biases are (out, 1) columns.
    """
    ks = jax.random.split(key, 6)

    def linear(kw, kb, fan_in, fan_out):
        bound = 1.0 / jnp.sqrt(jnp.float32(fan_in))
        w = jax.random.uniform(kw, (fan_out, fan_in), jnp.float32, -bound, bound)
        b = jax.random.uniform(kb, (fan_out, 1), jnp.float32, -bound, bound)
        return w, b

    w1, b1 = linear(ks[0], ks[1], 36, 32)
    w2, b2 = linear(ks[2], ks[3], 32, 12)
    w3, b3 = linear(ks[4], ks[5], 12, 2)
    return {"w1": w1, "b1": b1, "w2": w2, "b2": b2, "w3": w3, "b3": b3}


def _reference(candidate, params):
    x = candidate.astype(jnp.float32).reshape(candidate.shape[0], -1)
    h1 = jnp.maximum(x @ params["w1"].T + params["b1"].T, 0.0)
    h2 = jnp.maximum(h1 @ params["w2"].T + params["b2"].T, 0.0)
    return h2 @ params["w3"].T + params["b3"].T


if __name__ == "__main__":
    key = jax.random.PRNGKey(0)
    k_in, k_in2, k_par = jax.random.split(key, 3)
    params = init_params(k_par)

    # Primary small case: batch=2 poses, 18 keypoints x (x, y) -> 36 flattened features.
    candidate = jax.random.normal(k_in, (2, 18, 2), dtype=jnp.float32)
    out = jax.block_until_ready(sitting_pose_net(candidate, params))
    ref = _reference(candidate, params)
    assert out.shape == (2, 2) and out.dtype == jnp.float32
    # bf16 streaming of inputs/weights (f32 accumulation + f32 intermediates) ->
    # error is dominated by bf16 quantization of x/W; loose tolerance vs f32 ref.
    assert jnp.allclose(out, ref, atol=5e-2, rtol=5e-2), "mismatch vs JAX reference (B=2)"

    # Secondary case exercising multiple grid steps + ragged (non-multiple-of-TB) tail.
    candidate2 = jax.random.normal(k_in2, (2000, 18, 2), dtype=jnp.float32)
    out2 = jax.block_until_ready(sitting_pose_net(candidate2, params))
    ref2 = _reference(candidate2, params)
    assert out2.shape == (2000, 2)
    assert jnp.allclose(out2, ref2, atol=5e-2, rtol=5e-2), "mismatch vs JAX reference (B=2000)"

    print("KERNEL_OK")
</pallas_src>

<mosaic_0001>
module attributes {stable_mosaic.version = 11 : i64} {
  func.func @_mlp_kernel(%arg0: i32, %arg1: memref<36x2xbf16, #tpu.memory_space<vmem>>, %arg2: memref<32x36xbf16, #tpu.memory_space<vmem>>, %arg3: memref<32x1xf32, #tpu.memory_space<vmem>>, %arg4: memref<12x32xbf16, #tpu.memory_space<vmem>>, %arg5: memref<12x1xf32, #tpu.memory_space<vmem>>, %arg6: memref<2x12xbf16, #tpu.memory_space<vmem>>, %arg7: memref<2x1xf32, #tpu.memory_space<vmem>>, %arg8: memref<2x2xf32, #tpu.memory_space<vmem>>) attributes {dimension_semantics = [#tpu.dimension_semantics<parallel>], iteration_bounds = array<i64: 1>, scalar_prefetch = 0 : i64, scratch_operands = 0 : i64, tpu.core_type = #tpu.core_type<tc>, window_params = [{transform_indices = @transform_0, window_bounds = array<i64: 36, 2>}, {pipeline_mode = #tpu.pipeline_mode<synchronous>, transform_indices = @transform_1, window_bounds = array<i64: 32, 36>}, {pipeline_mode = #tpu.pipeline_mode<synchronous>, transform_indices = @transform_2, window_bounds = array<i64: 32, 1>}, {pipeline_mode = #tpu.pipeline_mode<synchronous>, transform_indices = @transform_3, window_bounds = array<i64: 12, 32>}, {pipeline_mode = #tpu.pipeline_mode<synchronous>, transform_indices = @transform_4, window_bounds = array<i64: 12, 1>}, {pipeline_mode = #tpu.pipeline_mode<synchronous>, transform_indices = @transform_5, window_bounds = array<i64: 2, 12>}, {pipeline_mode = #tpu.pipeline_mode<synchronous>, transform_indices = @transform_6, window_bounds = array<i64: 2, 1>}, {transform_indices = @transform_7, window_bounds = array<i64: 2, 2>}]} {
    %c0 = arith.constant 0 : index
    %c0_0 = arith.constant 0 : index
    %0 = vector.load %arg1[%c0, %c0_0] : memref<36x2xbf16, #tpu.memory_space<vmem>>, vector<36x2xbf16>
    %c0_1 = arith.constant 0 : index
    %c0_2 = arith.constant 0 : index
    %1 = vector.load %arg2[%c0_1, %c0_2] : memref<32x36xbf16, #tpu.memory_space<vmem>>, vector<32x36xbf16>
    %cst = arith.constant dense<0.000000e+00> : vector<32x2xf32>
    %2 = tpu.matmul %1, %0, %cst {dimension_numbers = #tpu.dot_dimension_numbers<[1], [0], [0], [1], [0, 0, 1, 1], [], []>} : vector<32x36xbf16>, vector<36x2xbf16>, vector<32x2xf32> -> vector<32x2xf32>
    %c0_3 = arith.constant 0 : index
    %c0_4 = arith.constant 0 : index
    %3 = vector.load %arg3[%c0_3, %c0_4] : memref<32x1xf32, #tpu.memory_space<vmem>>, vector<32x1xf32>
    %4 = vector.broadcast %3 : vector<32x1xf32> to vector<32x2xf32>
    %5 = arith.addf %2, %4 : vector<32x2xf32>
    %cst_5 = arith.constant 0.000000e+00 : f32
    %6 = vector.broadcast %cst_5 : f32 to vector<32x2xf32>
    %7 = arith.maximumf %5, %6 : vector<32x2xf32>
    %c0_6 = arith.constant 0 : index
    %c0_7 = arith.constant 0 : index
    %8 = vector.load %arg4[%c0_6, %c0_7] : memref<12x32xbf16, #tpu.memory_space<vmem>>, vector<12x32xbf16>
    %cst_8 = arith.constant dense<0.000000e+00> : vector<12x2xf32>
    %9 = tpu.matmul %8, %7, %cst_8 {dimension_numbers = #tpu.dot_dimension_numbers<[1], [0], [0], [1], [0, 0, 1, 1], [], []>} : vector<12x32xbf16>, vector<32x2xf32>, vector<12x2xf32> -> vector<12x2xf32>
    %c0_9 = arith.constant 0 : index
    %c0_10 = arith.constant 0 : index
    %10 = vector.load %arg5[%c0_9, %c0_10] : memref<12x1xf32, #tpu.memory_space<vmem>>, vector<12x1xf32>
    %11 = vector.broadcast %10 : vector<12x1xf32> to vector<12x2xf32>
    %12 = arith.addf %9, %11 : vector<12x2xf32>
    %cst_11 = arith.constant 0.000000e+00 : f32
    %13 = vector.broadcast %cst_11 : f32 to vector<12x2xf32>
    %14 = arith.maximumf %12, %13 : vector<12x2xf32>
    %c0_12 = arith.constant 0 : index
    %c0_13 = arith.constant 0 : index
    %15 = vector.load %arg6[%c0_12, %c0_13] : memref<2x12xbf16, #tpu.memory_space<vmem>>, vector<2x12xbf16>
    %cst_14 = arith.constant dense<0.000000e+00> : vector<2x2xf32>
    %16 = tpu.matmul %15, %14, %cst_14 {dimension_numbers = #tpu.dot_dimension_numbers<[1], [0], [0], [1], [0, 0, 1, 1], [], []>} : vector<2x12xbf16>, vector<12x2xf32>, vector<2x2xf32> -> vector<2x2xf32>
    %c0_15 = arith.constant 0 : index
    %c0_16 = arith.constant 0 : index
    %17 = vector.load %arg7[%c0_15, %c0_16] : memref<2x1xf32, #tpu.memory_space<vmem>>, vector<2x1xf32>
    %18 = vector.broadcast %17 : vector<2x1xf32> to vector<2x2xf32>
    %19 = arith.addf %16, %18 : vector<2x2xf32>
    %c0_17 = arith.constant 0 : index
    %c0_18 = arith.constant 0 : index
    %20 = vector.load %arg8[%c0_17, %c0_18] : memref<2x2xf32, #tpu.memory_space<vmem>>, vector<2x2xf32>
    tpu.vector_store %arg8[%c0_17, %c0_18], %19 {strides = array<i32>} : memref<2x2xf32, #tpu.memory_space<vmem>>, vector<2x2xf32>,
    return
  }
  func.func @transform_0(%arg0: i32) -> (i32, i32) {
    %c0_i32 = arith.constant 0 : i32
    %c0_i32_0 = arith.constant 0 : i32
    return %c0_i32, %arg0 : i32, i32
  }
  func.func @transform_1(%arg0: i32) -> (i32, i32) {
    %c0_i32 = arith.constant 0 : i32
    %c0_i32_0 = arith.constant 0 : i32
    %c0_i32_1 = arith.constant 0 : i32
    return %c0_i32, %c0_i32_0 : i32, i32
  }
  func.func @transform_2(%arg0: i32) -> (i32, i32) {
    %c0_i32 = arith.constant 0 : i32
    %c0_i32_0 = arith.constant 0 : i32
    %c0_i32_1 = arith.constant 0 : i32
    return %c0_i32, %c0_i32_0 : i32, i32
  }
  func.func @transform_3(%arg0: i32) -> (i32, i32) {
    %c0_i32 = arith.constant 0 : i32
    %c0_i32_0 = arith.constant 0 : i32
    %c0_i32_1 = arith.constant 0 : i32
    return %c0_i32, %c0_i32_0 : i32, i32
  }
  func.func @transform_4(%arg0: i32) -> (i32, i32) {
    %c0_i32 = arith.constant 0 : i32
    %c0_i32_0 = arith.constant 0 : i32
    %c0_i32_1 = arith.constant 0 : i32
    return %c0_i32, %c0_i32_0 : i32, i32
  }
  func.func @transform_5(%arg0: i32) -> (i32, i32) {
    %c0_i32 = arith.constant 0 : i32
    %c0_i32_0 = arith.constant 0 : i32
    %c0_i32_1 = arith.constant 0 : i32
    return %c0_i32, %c0_i32_0 : i32, i32
  }
  func.func @transform_6(%arg0: i32) -> (i32, i32) {
    %c0_i32 = arith.constant 0 : i32
    %c0_i32_0 = arith.constant 0 : i32
    %c0_i32_1 = arith.constant 0 : i32
    return %c0_i32, %c0_i32_0 : i32, i32
  }
  func.func @transform_7(%arg0: i32) -> (i32, i32) {
    %c0_i32 = arith.constant 0 : i32
    %c0_i32_0 = arith.constant 0 : i32
    return %c0_i32, %arg0 : i32, i32
  }
}

</mosaic_0001>

<bundles_post_ra>
// kernel: sitting_pose_net.2
= control target key start
LH: loop header
LB: loop body
LE: loop exit
PB: predicated region body
PF: predicated region fallthrough
CT: control target
= control target key end

     0   :  { %vm128_vm0 = vcmask 293888   ;;  %v460_v4 = vmov 0   ;;  %vm135_vm1 = vcmask 1041408   ;;  %v461_v17 = vmov 0.0   ;;  %s552_s0 = inlined_call_operand.vmem [shape: bf16[32,36], index: 0, kind: input, shape index: {}]   ;;  %s553_s1 = inlined_call_operand.vmem [shape: f32[32,1], index: 1, kind: input, shape index: {}]   ;;  %s554_s2 = inlined_call_operand.vmem [shape: bf16[12,32], index: 2, kind: input, shape index: {}]   ;;  %s555_s3 = inlined_call_operand.vmem [shape: f32[12,1], index: 3, kind: input, shape index: {}]   ;;  %s556_s4 = inlined_call_operand.vmem [shape: bf16[2,12], index: 4, kind: input, shape index: {}]   ;;  %s557_s5 = inlined_call_operand.vmem [shape: f32[2,1], index: 5, kind: input, shape index: {}]   ;;  %s558_s6 = inlined_call_operand.vmem [shape: bf16[2,36], index: 6, kind: input, shape index: {}]   ;;  %s559_s7 = inlined_call_operand.vmem [shape: f32[2,2], index: 7, kind: output, shape index: {}]  }
   0x1   :  { %v386_v0 = vld [vmem:[%s558_s6 + $0x10] sm:$0xf]  ;;  %v454_v1 = vld [vmem:[%s558_s6 + $0x8] sm:$0xff]   ;;  %v26_v2 = vld [vmem:[%s558_s6] sm:$0xff]   ;;  %451 = vset.pattern.permute.xlu0 %v460_v4  ;;  %452 = vset.pattern.permute.xlu1 %v460_v4  ;;  %vm462_vm2 = vmmov 0   ;;  %vm211_vm3 = vcmask 261120  }
   0x2   :  { %68 = vst [vmem:[#allocation2 + $0x10] sm:$0xf] %v386_v0  ;;  %402 = vst [vmem:[#allocation2 + $0x8] sm:$0xff] %v454_v1   ;;  %v457_v3 = vld [vmem:[%s552_s0] sm:$0xff]   ;;  %v82_v5 = vld [vmem:[%s553_s1 + $0x18] sm:$0xff]  ;;  %427 = vmatprep.subr.mxu1 %v461_v17  ;;  %435 = vmatprep.mubr.msk.bf16.mxu1 %vm462_vm2, %v461_v17  ;;  %vm301_vm4 = vcmask 1043456  }
   0x3   :  { %32 = vst [vmem:[#allocation2] sm:$0xff] %v26_v2   ;;  %423 = vmatprep.mubr.msk.bf16.mxu0 %vm128_vm0, %v457_v3  ;;  %100 = vperm.xlu0 %451, %v82_v5   ;;  %v80_v6 = vld [vmem:[%s553_s1 + $0x8] sm:$0xff]  ;;  %v81_v7 = vld [vmem:[%s553_s1 + $0x10] sm:$0xff]  ;;  %v79_v8 = vld [vmem:[%s553_s1] sm:$0xff]  ;;  %vm297_vm5 = vcmask 97280   ;;  %vm377_vm6 = vcmask 9216  }
   0x4   :  { %90 = vperm.xlu1 %452, %v80_v6   ;;  %v195_v9 = vld [vmem:[%s555_s3 + $0x8] sm:$0xf]  ;;  %v194_v13 = vld [vmem:[%s555_s3] sm:$0xff] }
   0x5   :  { %v291_v15 = vld [vmem:[%s557_s5] sm:$0x3]  ;;  %v458_v16 = vld [vmem:[%s552_s0 + $0x8] sm:$0xff]  }
   0x6   :  { %v459_v33 = vld [vmem:[%s554_s2] sm:$0x3f]  }
   0x7   :  { %95 = vperm.xlu0 %451, %v81_v7   ;;  %v290_v45 = vld [vmem:[%s556_s4] sm:$0x1] }
   0x8   :  { %85 = vperm.xlu1 %452, %v79_v8  }
   0x9   :  { %v453_v10 = vld [vmem:[#allocation2 + $0x10] ss:$0 sps:$4 sm:$0x33]   ;;  %v455_v11 = vld [vmem:[#allocation2 + $0x8] sm:$0xff]  }
   0xa   :  { %447 = vmatprep.subr.msk.bf16.mxu0 %vm135_vm1, %v453_v10  ;;  %v137_v12 = vsel %vm135_vm1, %v453_v10, 0  ;;  %v456_v14 = vld [vmem:[#allocation2] sm:$0xff]  }
   0xb   :  { %418 = vmatpush3.bf16.msra.mxu0 %v137_v12  ;;  %203 = vperm.xlu0 %451, %v195_v9  }
   0xc   :  { %419 = vmatprep.subr.bf16.mxu0 %v455_v11  ;;  %198 = vperm.xlu1 %452, %v194_v13  }
   0xf   :  { %420 = vmatpush3.bf16.msra.mxu0 %v455_v11  ;;  %294 = vperm.xlu0 %451, %v291_v15  }
  0x10   :  { %421 = vmatprep.subr.bf16.mxu0 %v456_v14 }
  0x13   :  { %422 = vmatpush3.bf16.msra.mxu0 %v456_v14 }
  0x16   :  { %424 = vmatmul.mubr.msk.bf16.vlgmr.msra.gmra.mxu0 %vm128_vm0, %v458_v16 }
  0x7e   :  { %v101_v18 = vpop.permute.xlu0 %100 }
  0x7f   :  { %v91_v19 = vpop.permute.xlu1 %90 }
  0x82   :  { %v96_v22 = vpop.permute.xlu0 %95 }
  0x83   :  { %v86_v26 = vpop.permute.xlu1 %85 }
  0x86   :  { %v204_v37 = vpop.permute.xlu0 %203 }
  0x87   :  { %v199_v38 = vpop.permute.xlu1 %198 }
  0x8a   :  { %v295_v46 = vpop.permute.xlu0 %294 }
  0xd6   :  { %v425_v20 = vpop.f32.mrf.mxu0 }
  0xd7   :  { %v182_v24 = vadd.f32 %v425_v20, %v96_v22 }
  0xd8   :  { %v173_v21 = vpop.f32.mrf.mxu0 }
  0xd9   :  { %v190_v30 = vmax.f32 %v182_v24, 0.0  ;;  %v174_v31 = vadd.f32 %v173_v21, %v86_v26 }
  0xda   :  { %v426_v23 = vpop.f32.mrf.mxu0 }
  0xdb   :  { %v185_v25 = vadd.f32 %v426_v23, %v101_v18  ;;  %v188_v34 = vmax.f32 %v174_v31, 0.0 }
  0xdc   :  { %v176_v27 = vpop.f32.mrf.mxu0 }
  0xdd   :  { %v191_v28 = vmax.f32 %v185_v25, 0.0  ;;  %v177_v29 = vadd.f32 %v176_v27, %v91_v19 }
  0xdf   :  { %428 = vmatpush3.msra.mxu1 %v191_v28  ;;  %v189_v32 = vmax.f32 %v177_v29, 0.0 }
  0xe0   :  { %429 = vmatprep.subr.mxu1 %v461_v17 }
  0xe1   :  { %430 = vmatpush3.msra.mxu1 %v190_v30 }
  0xe2   :  { %431 = vmatprep.subr.mxu1 %v461_v17 }
  0xe3   :  { %432 = vmatpush3.msra.mxu1 %v189_v32 }
  0xe4   :  { %433 = vmatprep.subr.mxu1 %v461_v17 }
  0xe5   :  { %434 = vmatpush3.msra.mxu1 %v188_v34 }
  0xe6   :  { %436 = vmatmul.mubr.msk.bf16.vlgmr.msra.gmra.mxu1 %vm211_vm3, %v459_v33  ;;  %439 = vmatprep.subr.mxu1 %v461_v17 }
  0xe7   :  { %443 = vmatprep.mubr.msk.bf16.mxu1 %vm462_vm2, %v461_v17 }
 0x1a6   :  { %v281_v35 = vpop.f32.mrf.mxu1 }
 0x1a7   :  { %v282_v40 = vadd.f32 %v281_v35, %v199_v38 }
 0x1a8   :  { %v437_v36 = vpop.f32.mrf.mxu1 }
 0x1a9   :  { %v288_v44 = vmax.f32 %v282_v40, 0.0 }
 0x1aa   :  { %v284_v39 = vpop.f32.mrf.mxu1 }
 0x1ab   :  { %v285_v41 = vadd.f32 %v284_v39, %v204_v37 }
 0x1ac   :  { %v438_v42 = vpop.f32.mrf.mxu1 }
 0x1ad   :  { %v289_v43 = vmax.f32 %v285_v41, 0.0 }
 0x1af   :  { %440 = vmatpush3.msk.msra.mxu1 %vm301_vm4, %v289_v43 }
 0x1b0   :  { %441 = vmatprep.subr.mxu1 %v461_v17 }
 0x1b1   :  { %442 = vmatpush3.msra.mxu1 %v288_v44 }
 0x1b2   :  { %444 = vmatmul.mubr.msk.bf16.vlgmr.msra.gmra.mxu1 %vm297_vm5, %v290_v45 }
 0x272   :  { %v371_v47 = vpop.f32.mrf.mxu1 }
 0x273   :  { %v372_v48 = vadd.f32 %v371_v47, %v295_v46 }
 0x274   :  { %v445_v49 = vpop.f32.mrf.mxu1 }
 0x275   :  { %378 = vst.msk [vmem:[%s559_s7] sm:$0x3] %vm377_vm6, %v372_v48 }
 0x276   :  { %v374_v50 = vpop.f32.mrf.mxu1 }
 0x278   :  { %v446_v51 = vpop.f32.mrf.mxu1 }

</bundles_post_ra>
